<compile_context>
chip_gen: v7x
topology: tpu7x:2x2x1
jax: 0.10.0
libtpu: 0.0.40
codegen_flags: <defaults>
</compile_context>

<pallas_src>
import functools
import math

import numpy as np
import jax
import jax.numpy as jnp
from jax.experimental import pallas as pl
from jax.experimental.pallas import tpu as pltpu


# ----------------------------------------------------------------------------
# Multi-index construction (host-side, mirrors PolyBasis.mi_terms exactly)
# ----------------------------------------------------------------------------
def mi_terms(ndim: int, nord: int) -> np.ndarray:
    q_num = [math.comb(ndim + i - 1, i) for i in range(nord + 1)]
    mul_ind = np.zeros(ndim, dtype=int)
    mul_ind = np.vstack([mul_ind, np.eye(ndim, dtype=int)])
    I = np.eye(ndim, dtype=int)
    ind = [1] * ndim
    for j in range(1, nord):
        ind_new = []
        for i in range(ndim):
            a0 = np.copy(I[int(np.sum(ind[:i])):, :])
            a0[:, i] += 1
            mul_ind = np.vstack([mul_ind, a0])
            ind_new += [a0.shape[0]]
        ind = ind_new
        I = np.copy(mul_ind[np.sum(q_num[:j + 1]):, :])
    return mul_ind


def _round_up(a: int, b: int) -> int:
    return (a + b - 1) // b * b


# ----------------------------------------------------------------------------
# Pallas kernel
# ----------------------------------------------------------------------------
def pce_kernel(xT_ref, w_ref, sel_ref, o_ref, *, ndim, nord, poly_name):
    """Compute W_eff @ psi(x)^T for one lane-dense tile of rows.

    xT_ref  : (ndim, tn)              VMEM, batch N on lanes
    w_ref   : (out, npce)             VMEM, resident across grid steps
    sel_ref : (ndim, npce, K)         VMEM, one-hot selectors, K=(nord+1)*ndim
    o_ref   : (out, tn)               VMEM, lane-dense output store
    """
    xT = xT_ref[...]                               # (ndim, tn) f32

    # 1-D polynomial recurrence on the full (ndim, tn) block (unnormalized;
    # Hermite normalization is folded into the weight on the host).
    # NOTE: pce_order == 0 is not supported by the reference module either.
    Hfull = [jnp.ones_like(xT), xT]                # orders 0, 1
    for k in range(2, nord + 1):
        if poly_name == 'hermite':
            Hfull.append(xT * Hfull[k - 1] - float(k - 1) * Hfull[k - 2])
        else:  # legendre
            Hfull.append(((2.0 * k - 1.0) * xT * Hfull[k - 1]
                          - float(k - 1) * Hfull[k - 2]) * (1.0 / float(k)))

    # Hall[k*ndim + j, :] = H_k(x_j)   -> ((nord+1)*ndim, tn)
    Hall = jnp.concatenate(Hfull, axis=0)

    # psi = prod_j (Sel_j @ Hall), each term a full (npce, tn) block (MXU
    # gather + full-width VPU multiplies; no per-row slices, no spills).
    psi = jnp.dot(sel_ref[0], Hall, preferred_element_type=jnp.float32)
    for j in range(1, ndim):
        psi = psi * jnp.dot(sel_ref[j], Hall,
                            preferred_element_type=jnp.float32)

    # y^T = W_eff @ psi   (MXU), lane-dense store.
    o_ref[...] = jnp.dot(w_ref[...], psi, preferred_element_type=jnp.float32)


# ----------------------------------------------------------------------------
# Wrapper
# ----------------------------------------------------------------------------
def pce_forward(x, weight, *, pce_order, poly_name, row_tile=8192):
    assert poly_name in ('hermite', 'legendre')
    assert pce_order >= 1, "pce_order must be >= 1 (same as the reference)"
    x = jnp.asarray(x, jnp.float32)
    weight = jnp.asarray(weight, jnp.float32)
    N, in_features = x.shape
    out_features, npce = weight.shape
    mi = mi_terms(in_features, pce_order)
    assert mi.shape[0] == npce

    nordp1 = pce_order + 1
    K = nordp1 * in_features

    # One-hot selectors: sel[j, i, mi[i,j]*ndim + j] = 1 (tiny, resident).
    sel_np = np.zeros((in_features, npce, K), np.float32)
    for j in range(in_features):
        for i in range(npce):
            sel_np[j, i, int(mi[i, j]) * in_features + j] = 1.0
    sel = jnp.asarray(sel_np)

    # Fold the Hermite 1/sqrt(k!) normalization into the weight columns:
    # W_eff[:, i] = W[:, i] * prod_j 1/sqrt(mi[i,j]!).
    if poly_name == 'hermite':
        col_scale = np.array(
            [np.prod([1.0 / math.sqrt(math.factorial(int(k))) for k in mi[i]])
             for i in range(npce)], dtype=np.float32)
        w_eff = weight * jnp.asarray(col_scale)[None, :]
    else:
        w_eff = weight

    # --- Row-tile selection -------------------------------------------------
    # Cap tn so the per-tile VMEM footprint (I/O double buffers + Hfull/Hall +
    # psi intermediates) stays around 12 MiB -> fits the default scoped-VMEM
    # limit on every generation (16 MiB on v5e, 32 MiB on v6e/v7x).
    per_lane_bytes = 4 * (2 * in_features + 2 * out_features
                          + 2 * nordp1 * in_features + 3 * npce)
    tn_cap = max(128, ((12 << 20) // per_lane_bytes) // 128 * 128)
    row_tile = max(128, _round_up(min(row_tile, tn_cap), 128))

    n128 = _round_up(N, 128)
    g = -(-n128 // row_tile)                 # number of grid steps
    if g == 1 and n128 >= 256:
        g = 2                                # >=2 steps: feeds both v7x TCs
    tn = _round_up(-(-n128 // g), 128)       # tile width, multiple of 128
    n_pad = tn * g

    # Feed x transposed: (in_features, n_pad) so N sits on the lane axis.
    xT = jnp.zeros((in_features, n_pad), jnp.float32).at[:, :N].set(x.T)

    kernel = functools.partial(pce_kernel, ndim=in_features,
                               nord=pce_order, poly_name=poly_name)

    yT = pl.pallas_call(
        kernel,
        out_shape=jax.ShapeDtypeStruct((out_features, n_pad), jnp.float32),
        grid=(g,),
        in_specs=[
            pl.BlockSpec((in_features, tn), lambda i: (0, i)),
            pl.BlockSpec((out_features, npce), lambda i: (0, 0)),
            pl.BlockSpec((in_features, npce, K), lambda i: (0, 0, 0)),
        ],
        out_specs=pl.BlockSpec((out_features, tn), lambda i: (0, i)),
        compiler_params=pltpu.CompilerParams(
            dimension_semantics=("parallel",)),
    )(xT, w_eff, sel)

    # Back to the PyTorch layout (N, out_features). Consumers that can take
    # (out_features, N) directly could skip this transpose to save one HBM
    # round trip.
    return yT[:, :N].T


# ----------------------------------------------------------------------------
# Pure numpy reference (mirrors the PyTorch module exactly) for verification
# ----------------------------------------------------------------------------
def _poly_1d_np(x, nord, poly_name):
    N = x.shape[0]
    H = np.zeros((N, nord + 1))
    H[:, 0] = 1.0
    H[:, 1] = x
    for k in range(2, nord + 1):
        if poly_name == 'hermite':
            H[:, k] = x * H[:, k - 1] - (k - 1) * H[:, k - 2]
        else:
            H[:, k] = ((2 * k - 1) * x * H[:, k - 1]
                       - (k - 1) * H[:, k - 2]) / k
    if poly_name == 'hermite':
        H = H / np.array([math.sqrt(math.factorial(k))
                          for k in range(nord + 1)])
    return H


def _pce_ref_np(x, weight, pce_order, poly_name):
    x = np.asarray(x, dtype=np.float64)
    w = np.asarray(weight, dtype=np.float64)
    mi = mi_terms(x.shape[1], pce_order)
    H = [_poly_1d_np(x[:, j], pce_order, poly_name) for j in range(x.shape[1])]
    psi = np.ones((x.shape[0], mi.shape[0]))
    for i in range(mi.shape[0]):
        for j in range(x.shape[1]):
            psi[:, i] *= H[j][:, mi[i, j]]
    return psi @ w.T


# ----------------------------------------------------------------------------
# Main
# ----------------------------------------------------------------------------
if __name__ == "__main__":
    key = jax.random.PRNGKey(0)
    k1, k2, k3, k4 = jax.random.split(key, 4)

    # --- Case 1: Hermite chaos, tiny batch (pads to one 128-lane tile) ------
    in_features, out_features, pce_order, N = 4, 8, 3, 16
    npce = math.comb(in_features + pce_order, pce_order)        # = 35

    x = jax.random.normal(k1, (N, in_features), dtype=jnp.float32)
    bound = 1.0 / math.sqrt(npce)   # kaiming_uniform_(a=sqrt(5)) on (out, npce)
    weight = jax.random.uniform(k2, (out_features, npce), jnp.float32,
                                -bound, bound)

    y = pce_forward(x, weight, pce_order=pce_order, poly_name='hermite')
    y = jax.block_until_ready(y)
    y_ref = _pce_ref_np(np.asarray(x), np.asarray(weight),
                        pce_order, 'hermite')
    np.testing.assert_allclose(np.asarray(y), y_ref, rtol=1e-4, atol=1e-4)

    # --- Case 2: Legendre chaos, ragged N (exercises padding + 2-step grid) -
    in2, out2, ord2, N2 = 3, 5, 2, 300
    npce2 = math.comb(in2 + ord2, ord2)                          # = 10
    x2 = jax.random.uniform(k3, (N2, in2), jnp.float32, -1.0, 1.0)
    bound2 = 1.0 / math.sqrt(npce2)
    w2 = jax.random.uniform(k4, (out2, npce2), jnp.float32, -bound2, bound2)

    y2 = pce_forward(x2, w2, pce_order=ord2, poly_name='legendre')
    y2 = jax.block_until_ready(y2)
    y2_ref = _pce_ref_np(np.asarray(x2), np.asarray(w2), ord2, 'legendre')
    np.testing.assert_allclose(np.asarray(y2), y2_ref, rtol=1e-4, atol=1e-4)

    print("KERNEL_OK")
</pallas_src>

<mosaic_0001>
module attributes {stable_mosaic.version = 11 : i64} {
  func.func @pce_kernel(%arg0: i32, %arg1: memref<4x128xf32, #tpu.memory_space<vmem>>, %arg2: memref<8x35xf32, #tpu.memory_space<vmem>>, %arg3: memref<4x35x16xf32, #tpu.memory_space<vmem>>, %arg4: memref<8x128xf32, #tpu.memory_space<vmem>>) attributes {dimension_semantics = [#tpu.dimension_semantics<parallel>], iteration_bounds = array<i64: 1>, scalar_prefetch = 0 : i64, scratch_operands = 0 : i64, tpu.core_type = #tpu.core_type<tc>, window_params = [{transform_indices = @transform_0, window_bounds = array<i64: 4, 128>}, {pipeline_mode = #tpu.pipeline_mode<synchronous>, transform_indices = @transform_1, window_bounds = array<i64: 8, 35>}, {pipeline_mode = #tpu.pipeline_mode<synchronous>, transform_indices = @transform_2, window_bounds = array<i64: 4, 35, 16>}, {transform_indices = @transform_3, window_bounds = array<i64: 8, 128>}]} {
    %c0 = arith.constant 0 : index
    %c0_0 = arith.constant 0 : index
    %0 = vector.load %arg1[%c0, %c0_0] : memref<4x128xf32, #tpu.memory_space<vmem>>, vector<4x128xf32>
    %cst = arith.constant 1.000000e+00 : f32
    %1 = vector.broadcast %cst : f32 to vector<4x128xf32>
    %2 = arith.mulf %0, %0 : vector<4x128xf32>
    %cst_1 = arith.constant 1.000000e+00 : f32
    %3 = vector.broadcast %cst_1 : f32 to vector<4x128xf32>
    %4 = arith.mulf %3, %1 : vector<4x128xf32>
    %5 = arith.subf %2, %4 : vector<4x128xf32>
    %6 = arith.mulf %0, %5 : vector<4x128xf32>
    %cst_2 = arith.constant 2.000000e+00 : f32
    %7 = vector.broadcast %cst_2 : f32 to vector<4x128xf32>
    %8 = arith.mulf %7, %0 : vector<4x128xf32>
    %9 = arith.subf %6, %8 : vector<4x128xf32>
    %10 = tpu.concatenate %1, %0, %5, %9 in 0 : vector<4x128xf32>, vector<4x128xf32>, vector<4x128xf32>, vector<4x128xf32> -> vector<16x128xf32>
    %c0_3 = arith.constant 0 : index
    %c0_4 = arith.constant 0 : index
    %c0_5 = arith.constant 0 : index
    %11 = vector.load %arg3[%c0_3, %c0_4, %c0_5] : memref<4x35x16xf32, #tpu.memory_space<vmem>>, vector<1x35x16xf32>
    %12 = vector.shape_cast %11 : vector<1x35x16xf32> to vector<35x16xf32>
    %cst_6 = arith.constant dense<0.000000e+00> : vector<35x128xf32>
    %13 = tpu.matmul %12, %10, %cst_6 {dimension_numbers = #tpu.dot_dimension_numbers<[1], [0], [0], [1], [0, 0, 1, 1], [], []>} : vector<35x16xf32>, vector<16x128xf32>, vector<35x128xf32> -> vector<35x128xf32>
    %c1 = arith.constant 1 : index
    %c0_7 = arith.constant 0 : index
    %c0_8 = arith.constant 0 : index
    %14 = vector.load %arg3[%c1, %c0_7, %c0_8] : memref<4x35x16xf32, #tpu.memory_space<vmem>>, vector<1x35x16xf32>
    %15 = vector.shape_cast %14 : vector<1x35x16xf32> to vector<35x16xf32>
    %cst_9 = arith.constant dense<0.000000e+00> : vector<35x128xf32>
    %16 = tpu.matmul %15, %10, %cst_9 {dimension_numbers = #tpu.dot_dimension_numbers<[1], [0], [0], [1], [0, 0, 1, 1], [], []>} : vector<35x16xf32>, vector<16x128xf32>, vector<35x128xf32> -> vector<35x128xf32>
    %17 = arith.mulf %13, %16 : vector<35x128xf32>
    %c2 = arith.constant 2 : index
    %c0_10 = arith.constant 0 : index
    %c0_11 = arith.constant 0 : index
    %18 = vector.load %arg3[%c2, %c0_10, %c0_11] : memref<4x35x16xf32, #tpu.memory_space<vmem>>, vector<1x35x16xf32>
    %19 = vector.shape_cast %18 : vector<1x35x16xf32> to vector<35x16xf32>
    %cst_12 = arith.constant dense<0.000000e+00> : vector<35x128xf32>
    %20 = tpu.matmul %19, %10, %cst_12 {dimension_numbers = #tpu.dot_dimension_numbers<[1], [0], [0], [1], [0, 0, 1, 1], [], []>} : vector<35x16xf32>, vector<16x128xf32>, vector<35x128xf32> -> vector<35x128xf32>
    %21 = arith.mulf %17, %20 : vector<35x128xf32>
    %c3 = arith.constant 3 : index
    %c0_13 = arith.constant 0 : index
    %c0_14 = arith.constant 0 : index
    %22 = vector.load %arg3[%c3, %c0_13, %c0_14] : memref<4x35x16xf32, #tpu.memory_space<vmem>>, vector<1x35x16xf32>
    %23 = vector.shape_cast %22 : vector<1x35x16xf32> to vector<35x16xf32>
    %cst_15 = arith.constant dense<0.000000e+00> : vector<35x128xf32>
    %24 = tpu.matmul %23, %10, %cst_15 {dimension_numbers = #tpu.dot_dimension_numbers<[1], [0], [0], [1], [0, 0, 1, 1], [], []>} : vector<35x16xf32>, vector<16x128xf32>, vector<35x128xf32> -> vector<35x128xf32>
    %25 = arith.mulf %21, %24 : vector<35x128xf32>
    %c0_16 = arith.constant 0 : index
    %c0_17 = arith.constant 0 : index
    %26 = vector.load %arg2[%c0_16, %c0_17] : memref<8x35xf32, #tpu.memory_space<vmem>>, vector<8x35xf32>
    %cst_18 = arith.constant dense<0.000000e+00> : vector<8x128xf32>
    %27 = tpu.matmul %26, %25, %cst_18 {dimension_numbers = #tpu.dot_dimension_numbers<[1], [0], [0], [1], [0, 0, 1, 1], [], []>} : vector<8x35xf32>, vector<35x128xf32>, vector<8x128xf32> -> vector<8x128xf32>
    %c0_19 = arith.constant 0 : index
    %c0_20 = arith.constant 0 : index
    %28 = vector.load %arg4[%c0_19, %c0_20] : memref<8x128xf32, #tpu.memory_space<vmem>>, vector<8x128xf32>
    tpu.vector_store %arg4[%c0_19, %c0_20], %27 {strides = array<i32>} : memref<8x128xf32, #tpu.memory_space<vmem>>, vector<8x128xf32>,
    return
  }
  func.func @transform_0(%arg0: i32) -> (i32, i32) {
    %c0_i32 = arith.constant 0 : i32
    %c0_i32_0 = arith.constant 0 : i32
    return %c0_i32, %arg0 : i32, i32
  }
  func.func @transform_1(%arg0: i32) -> (i32, i32) {
    %c0_i32 = arith.constant 0 : i32
    %c0_i32_0 = arith.constant 0 : i32
    %c0_i32_1 = arith.constant 0 : i32
    return %c0_i32, %c0_i32_0 : i32, i32
  }
  func.func @transform_2(%arg0: i32) -> (i32, i32, i32) {
    %c0_i32 = arith.constant 0 : i32
    %c0_i32_0 = arith.constant 0 : i32
    %c0_i32_1 = arith.constant 0 : i32
    %c0_i32_2 = arith.constant 0 : i32
    return %c0_i32, %c0_i32_0, %c0_i32_1 : i32, i32, i32
  }
  func.func @transform_3(%arg0: i32) -> (i32, i32) {
    %c0_i32 = arith.constant 0 : i32
    %c0_i32_0 = arith.constant 0 : i32
    return %c0_i32, %arg0 : i32, i32
  }
}

</mosaic_0001>

<bundles_post_ra>
// kernel: tpu_custom_call.1
= control target key start
LH: loop header
LB: loop body
LE: loop exit
PB: predicated region body
PF: predicated region fallthrough
CT: control target
= control target key end

     0   :  { %v790_v1 = vmov 0.0|0.0   ;;  %vm791_vm0 = vmmov 0   ;;  %v792_v3 = vmov 0.0   ;;  %vm27_vm1 = vcmask 1043456   ;;  %s961_s0 = inlined_call_operand.vmem [shape: f32[4,128], index: 0, kind: input, shape index: {}]   ;;  %s962_s1 = inlined_call_operand.vmem [shape: f32[8,35], index: 1, kind: input, shape index: {}]   ;;  %s963_s2 = inlined_call_operand.vmem [shape: f32[4,35,16], index: 2, kind: input, shape index: {}]   ;;  %s964_s3 = inlined_call_operand.hbm [shape: f32[8,128], index: 3, kind: output, shape index: {}]  }
   0x1   :  { %v15_v0 = vld [vmem:[%s961_s0] sm:$0xf]  ;;  %744 = vmatprep.subr.bf16.mxu0 %v790_v1  ;;  %747 = vmatprep.subr.bf16.mxu1 %v790_v1 }
   0x2   :  { %v16_v2 = vmul.f32 %v15_v0, %v15_v0  ;;  %659 = vmatprep.mubr.msk.f32.mxu0 %vm791_vm0, %v792_v3  ;;  %678 = vmatprep.mubr.msk.f32.mxu1 %vm791_vm0, %v792_v3  ;;  %v19_v5 = vmul.f32 2.0, %v15_v0  ;;  %v22_v7 = vrot.slane %v15_v0, 4 }
   0x4   :  { %v583_v4 = vadd.f32 -1.0, %v16_v2 }
   0x6   :  { %v18_v6 = vmul.f32 %v583_v4, %v15_v0 }
   0x8   :  { %v20_v8 = vsub.f32 %v18_v6, %v19_v5 }
   0x9   :  { %8 = vsyncpa [#allocation3], 0  ;;  %v28_v10 = vsel %vm27_vm1, 1.0, %v22_v7  ;;  %v30_v13 = vld [vmem:[%s963_s2] sm:$0xff]  ;;  %vm35_vm2 = vcmask 130048   ;;  %v589_v14 = vld [vmem:[%s963_s2 + $0x28] sm:$0xff] }
   0xa   :  { %v25_v9 = vrot.slane %v20_v8, 4  ;;  %v31_v15 = vld [vmem:[%s963_s2 + $0x8] sm:$0xff]  ;;  %v590_v16 = vld [vmem:[%s963_s2 + $0x30] sm:$0xff]  ;;  %v591_v18 = vld [vmem:[%s963_s2 + $0x38] sm:$0xff]  ;;  %vm494_vm3 = vcmask 1042432   ;;  %vm490_vm4 = vcmask 285696  }
   0xb   :  { %v32_v17 = vld [vmem:[%s963_s2 + $0x10] sm:$0xff]  ;;  %v33_v19 = vld [vmem:[%s963_s2 + $0x18] sm:$0xff]  ;;  %v592_v20 = vld [vmem:[%s963_s2 + $0x40] sm:$0xff]  ;;  %s793_s26 = smov [#allocation2]  }
   0xc   :  { %v29_v11 = vsel %vm27_vm1, %v583_v4, %v25_v9  ;;  %v34_v21 = vld [vmem:[%s963_s2 + $0x20] sm:$0x7]  ;;  %v593_v22 = vld [vmem:[%s963_s2 + $0x48] sm:$0x7]  ;;  %v599_v23 = vld [vmem:[%s963_s2 + $0x50] sm:$0xff]  ;;  %s575_s27 = sshll.u32 %s793_s26, 4  ;;  %s576_s27 = int_to_ptr.vmem [resolvable:$true] %s575_s27 }
   0xd   :  { %v745_v12 = vpack.c.bf16 %v29_v11, %v28_v10  ;;  %v609_v24 = vld [vmem:[%s963_s2 + $0x78] sm:$0xff]  ;;  %v610_v26 = vld [vmem:[%s963_s2 + $0x80] sm:$0xff]  ;;  %v611_v28 = vld [vmem:[%s963_s2 + $0x88] sm:$0xff]  ;;  %s766_s28 = scalar_lea.vmem %s576_s27, 128  ;;  %p771_p1 = scmp.lt.s32.totalorder %s576_s27, %s576_s27 }
   0xe   :  { %v600_v25 = vld [vmem:[%s963_s2 + $0x58] sm:$0xff]  ;;  %v601_v27 = vld [vmem:[%s963_s2 + $0x60] sm:$0xff]  ;;  %v602_v29 = vld [vmem:[%s963_s2 + $0x68] sm:$0xff]  ;;  %p767_p0 = scmp.ne.s32.totalorder %s576_s27, %s766_s28  ;;  %p772_p2 = scmp.lt.s32.totalorder %s766_s28, %s766_s28 }
   0xf   :  { %746 = vmatpush3.bf16.msra.mxu0 %v745_v12  ;;  %749 = vmatpush3.bf16.msra.mxu1 %v745_v12  ;;  %v612_v30 = vld [vmem:[%s963_s2 + $0x90] sm:$0xff]  ;;  %v613_v32 = vld [vmem:[%s963_s2 + $0x98] sm:$0x7] }
  0x10   :  { %750 = vmatprep.subr.bf16.mxu0 %v790_v1  ;;  %753 = vmatprep.subr.bf16.mxu1 %v790_v1  ;;  %v603_v31 = vld [vmem:[%s963_s2 + $0x70] sm:$0x7]  ;;  %p773_p3 = por %p772_p2, %p771_p1 }
  0x12   :  { %660 = vmatmul.mubr.msk.f32.vlgmr.msra.gmra.mrb[0].mxu0 %vm35_vm2, %v30_v13  ;;  %679 = vmatmul.mubr.msk.f32.vlgmr.msra.gmra.mrb[0].mxu1 %vm35_vm2, %v589_v14  ;;  %p774_p4 = pnand %p773_p3, %p767_p0 }
  0x13   :  { %662 = vmatprep.mubr.msk.f32.mxu0 %vm791_vm0, %v792_v3  ;;  %681 = vmatprep.mubr.msk.f32.mxu1 %vm791_vm0, %v792_v3 }
  0x14   :  { %752 = vmatpush3.bf16.msra.mxu0 %v745_v12  ;;  %755 = vmatpush3.bf16.msra.mxu1 %v745_v12 }
  0x15   :  { %756 = vmatprep.subr.bf16.mxu0 %v790_v1 }
  0x16   :  { %663 = vmatmul.mubr.msk.f32.gmra.mrb[2].mxu0 %vm35_vm2, %v31_v15  ;;  %682 = vmatmul.mubr.msk.f32.gmra.mrb[2].mxu1 %vm35_vm2, %v590_v16 }
  0x17   :  { %665 = vmatprep.mubr.msk.f32.mxu0 %vm791_vm0, %v792_v3  ;;  %684 = vmatprep.mubr.msk.f32.mxu1 %vm791_vm0, %v792_v3 }
  0x1a   :  { %666 = vmatmul.mubr.msk.f32.gmra.mrb[4].mxu0 %vm35_vm2, %v32_v17  ;;  %685 = vmatmul.mubr.msk.f32.gmra.mrb[4].mxu1 %vm35_vm2, %v591_v18 }
  0x1b   :  { %668 = vmatprep.mubr.msk.f32.mxu0 %vm791_vm0, %v792_v3  ;;  %687 = vmatprep.mubr.msk.f32.mxu1 %vm791_vm0, %v792_v3 }
  0x1e   :  { %669 = vmatmul.mubr.msk.f32.gmra.mrb[6].mxu0 %vm35_vm2, %v33_v19  ;;  %688 = vmatmul.mubr.msk.f32.gmra.mrb[6].mxu1 %vm35_vm2, %v592_v20 }
  0x1f   :  { %671 = vmatprep.mubr.msk.f32.mxu0 %vm791_vm0, %v792_v3  ;;  %690 = vmatprep.mubr.msk.f32.mxu1 %vm791_vm0, %v792_v3 }
  0x22   :  { %672 = vmatmul.mubr.msk.f32.gmra.mrb[8].mxu0 %vm35_vm2, %v34_v21  ;;  %691 = vmatmul.mubr.msk.f32.gmra.mrb[8].mxu1 %vm35_vm2, %v593_v22 }
  0x23   :  { %697 = vmatprep.mubr.msk.f32.mxu0 %vm791_vm0, %v792_v3  ;;  %716 = vmatprep.mubr.msk.f32.mxu1 %vm791_vm0, %v792_v3 }
  0x26   :  { %698 = vmatmul.mubr.msk.f32.vlgmr.msra.gmra.mrb[10].mxu0 %vm35_vm2, %v599_v23  ;;  %717 = vmatmul.mubr.msk.f32.vlgmr.msra.gmra.mrb[10].mxu1 %vm35_vm2, %v609_v24 }
  0x27   :  { %700 = vmatprep.mubr.msk.f32.mxu0 %vm791_vm0, %v792_v3  ;;  %719 = vmatprep.mubr.msk.f32.mxu1 %vm791_vm0, %v792_v3 }
  0x2a   :  { %701 = vmatmul.mubr.msk.f32.gmra.mrb[12].mxu0 %vm35_vm2, %v600_v25  ;;  %720 = vmatmul.mubr.msk.f32.gmra.mrb[12].mxu1 %vm35_vm2, %v610_v26 }
  0x2b   :  { %703 = vmatprep.mubr.msk.f32.mxu0 %vm791_vm0, %v792_v3  ;;  %722 = vmatprep.mubr.msk.f32.mxu1 %vm791_vm0, %v792_v3 }
  0x2e   :  { %704 = vmatmul.mubr.msk.f32.gmra.mrb[14].mxu0 %vm35_vm2, %v601_v27  ;;  %723 = vmatmul.mubr.msk.f32.gmra.mrb[14].mxu1 %vm35_vm2, %v611_v28  ;;  %v489_v28 = vld [vmem:[%s962_s1] sm:$0xff] }
  0x2f   :  { %706 = vmatprep.mubr.msk.f32.mxu0 %vm791_vm0, %v792_v3  ;;  %725 = vmatprep.mubr.msk.f32.mxu1 %vm791_vm0, %v792_v3 }
  0x32   :  { %707 = vmatmul.mubr.msk.f32.gmra.mrb[16].mxu0 %vm35_vm2, %v602_v29  ;;  %726 = vmatmul.mubr.msk.f32.gmra.mrb[16].mxu1 %vm35_vm2, %v612_v30 }
  0x33   :  { %709 = vmatprep.mubr.msk.f32.mxu0 %vm791_vm0, %v792_v3  ;;  %728 = vmatprep.mubr.msk.f32.mxu1 %vm791_vm0, %v792_v3 }
  0x36   :  { %710 = vmatmul.mubr.msk.f32.gmra.mrb[18].mxu0 %vm35_vm2, %v603_v31  ;;  %729 = vmatmul.mubr.msk.f32.gmra.mrb[18].mxu1 %vm35_vm2, %v613_v32 }
  0x37   :  { %741 = vmatprep.mubr.msk.f32.mxu0 %vm791_vm0, %v792_v3 }
  0xe5   :  { %v117_v33 = vpop.f32.mrb[0].mxu0  ;;  %v228_v34 = vpop.f32.mrb[0].mxu1 }
  0xe6   :  { %v252_v35 = vmul.f32 %v228_v34, %v117_v33  ;;  %v661_v36 = vpop.f32.mrb[1].mxu0  ;;  %v680_v37 = vpop.f32.mrb[1].mxu1 }
  0xe9   :  { %v122_v38 = vpop.f32.mrb[2].mxu0  ;;  %v233_v39 = vpop.f32.mrb[2].mxu1 }
  0xea   :  { %v253_v40 = vmul.f32 %v233_v39, %v122_v38  ;;  %v664_v41 = vpop.f32.mrb[3].mxu0  ;;  %v683_v42 = vpop.f32.mrb[3].mxu1 }
  0xed   :  { %v127_v43 = vpop.f32.mrb[4].mxu0  ;;  %v238_v44 = vpop.f32.mrb[4].mxu1 }
  0xee   :  { %v254_v45 = vmul.f32 %v238_v44, %v127_v43  ;;  %v667_v46 = vpop.f32.mrb[5].mxu0  ;;  %v686_v47 = vpop.f32.mrb[5].mxu1 }
  0xf1   :  { %v132_v48 = vpop.f32.mrb[6].mxu0  ;;  %v243_v49 = vpop.f32.mrb[6].mxu1 }
  0xf2   :  { %v255_v50 = vmul.f32 %v243_v49, %v132_v48  ;;  %v670_v51 = vpop.f32.mrb[7].mxu0  ;;  %v689_v52 = vpop.f32.mrb[7].mxu1 }
  0xf5   :  { %v137_v53 = vpop.f32.mrb[8].mxu0  ;;  %v248_v54 = vpop.f32.mrb[8].mxu1 }
  0xf6   :  { %v256_v55 = vmul.f32 %v248_v54, %v137_v53  ;;  %v673_v56 = vpop.f32.mrb[9].mxu0  ;;  %v692_v57 = vpop.f32.mrb[9].mxu1 }
  0xf9   :  { %v344_v58 = vpop.f32.mrb[10].mxu0  ;;  %v460_v59 = vpop.f32.mrb[10].mxu1 }
  0xfa   :  { %v368_v60 = vmul.f32 %v344_v58, %v252_v35  ;;  %v699_v61 = vpop.f32.mrb[11].mxu0  ;;  %v718_v62 = vpop.f32.mrb[11].mxu1 }
  0xfc   :  { %v484_v63 = vmul.f32 %v460_v59, %v368_v60 }
  0xfd   :  { %v349_v0 = vpop.f32.mrb[12].mxu0  ;;  %v465_v2 = vpop.f32.mrb[12].mxu1 }
  0xfe   :  { %v369_v4 = vmul.f32 %v349_v0, %v253_v40  ;;  %v702_v5 = vpop.f32.mrb[13].mxu0  ;;  %v721_v6 = vpop.f32.mrb[13].mxu1 }
 0x100   :  { %v485_v7 = vmul.f32 %v465_v2, %v369_v4 }
 0x101   :  { %v354_v8 = vpop.f32.mrb[14].mxu0  ;;  %v470_v9 = vpop.f32.mrb[14].mxu1 }
 0x102   :  { %v757_v10 = vpack.c.bf16 %v485_v7, %v484_v63  ;;  %v370_v11 = vmul.f32 %v354_v8, %v254_v45  ;;  %v705_v12 = vpop.f32.mrb[15].mxu0  ;;  %v724_v13 = vpop.f32.mrb[15].mxu1 }
 0x104   :  { %v486_v14 = vmul.f32 %v470_v9, %v370_v11  ;;  %758 = vmatpush3.bf16.msra.mxu0 %v757_v10 }
 0x105   :  { %v359_v15 = vpop.f32.mrb[16].mxu0  ;;  %v475_v16 = vpop.f32.mrb[16].mxu1  ;;  %759 = vmatprep.subr.bf16.mxu0 %v790_v1 }
 0x106   :  { %v371_v17 = vmul.f32 %v359_v15, %v255_v50  ;;  %v708_v18 = vpop.f32.mrb[17].mxu0  ;;  %v727_v19 = vpop.f32.mrb[17].mxu1 }
 0x108   :  { %v487_v20 = vmul.f32 %v475_v16, %v371_v17 }
 0x109   :  { %v364_v21 = vpop.f32.mrb[18].mxu0  ;;  %v480_v22 = vpop.f32.mrb[18].mxu1 }
 0x10a   :  { %v760_v23 = vpack.c.bf16 %v487_v20, %v486_v14  ;;  %v372_v24 = vmul.f32 %v364_v21, %v256_v55  ;;  %v711_v25 = vpop.f32.mrb[19].mxu0  ;;  %v730_v26 = vpop.f32.mrb[19].mxu1 }
 0x10c   :  { %v488_v27 = vmul.f32 %v480_v22, %v372_v24  ;;  %761 = vmatpush3.bf16.msra.mxu0 %v760_v23 }
 0x10d   :  { %739 = vmatprep.subr.mxu0 %v792_v3 }
 0x110   :  { %740 = vmatpush3.msk.msra.mxu0 %vm494_vm3, %v488_v27 }
 0x111   :  { %742 = vmatmul.mubr.msk.f32.vlgmr.msra.gmra.mrb[20].mxu0 %vm490_vm4, %v489_v28 }
 0x1e4   :  { %v564_v1 = vpop.f32.mrb[20].mxu0 }
 0x1e5   :  { %568 = vst [vmem:[#allocation2] sm:$0xff] %v564_v1  ;;  %v743_v29 = vpop.f32.mrb[21].mxu0 }
 0x1e6   :  { %777 = shalt.err (!%p774_p4)
}
 0x1e7   :  { %s778_s1 = scalar_lea.hbm %s964_s3, 128 }
 0x1e8   :  { %p779_p5 = scmp.ne.s32.totalorder %s964_s3, %s778_s1  ;;  %p782_p6 = scmp.lt.u32.totalorder %s778_s1, %s964_s3 }
 0x1ea   :  { %p784_p7 = pnand %p782_p6, %p779_p5 }
 0x1ec   :  { %787 = shalt.err (!%p784_p7)
}
 0x1ed   :  { %578 = dma.vmem_to_hbm [thread:$0]  %s576_s27, 128, %s964_s3, [#allocation3]  }
 0x1ee   :  { %788 = dma.done.wait [#allocation3], 128  }
 0x1ef   :  { %789 = vsyncadd [#allocation3], 4294967168 }
 0x1f0   :  { %582 = vsyncpa [#allocation3], 1 }

</bundles_post_ra>
